<compile_context>
chip_gen: v6e
topology: v6e:2x2x1
jax: 0.10.0
libtpu: 0.0.40
codegen_flags: <defaults>
</compile_context>

<pallas_src>
import jax
import jax.numpy as jnp
from jax import lax
from jax.experimental import pallas as pl
from jax.experimental.pallas import tpu as pltpu

CI, H, W = 3, 4, 4                 # input channels / spatial
CO, KH, KW = 3, 3, 4               # Conv2d(3, 3, (3, 4))
OH, OW = H - KH + 1, W - KW + 1    # 2, 1
R_OUT, C_OUT = 3 * OH, CO          # logical output (1, 1, 6, 3)


def fused_model_kernel(x_ref, w_ref, b_ref, o_ref):
    """x_ref: (CI, H*W)=(3,16) VMEM, w_ref: (CO*CI, KH*KW)=(9,12) VMEM,
    b_ref: (CO,)=(3,) f32 SMEM, o_ref: (1, 1, 6, 3) VMEM."""
    x2 = x_ref[...]                                   # (3, 16)
    w2 = w_ref[...]                                   # (9, 12)

    # KW spans the full width (OW == 1), so each conv window is a contiguous
    # lane slice of length KH*W = 12.
    xw = [x2[:, oh * W: oh * W + KH * W] for oh in range(OH)]     # 2 x (3, 12)

    # y[co][oh] = sum(window * weight) + bias[co]; 216 MACs on VPU + reduce
    # (deliberately NOT the MXU).  Lane-reduce first, then finish the CI
    # (sublane) reduction with two vector adds so each result stays
    # vector-resident as a (1, 1) tile instead of a scalar round trip.
    vals = []                                         # NCHW-flat order k = co*OH + oh
    for co in range(CO):
        wb = w2[co * CI:(co + 1) * CI, :]             # (3, 12) static sublane slice
        b_co = b_ref[co]                              # SMEM scalar splat
        for oh in range(OH):
            col = jnp.sum(xw[oh] * wb, axis=1, keepdims=True)     # (3, 1)
            v = col[0:1, :] + col[1:2, :] + col[2:3, :]           # (1, 1)
            vals.append(v + b_co)

    # Fused view(1,2,3,1) + cat(dim=1) x3 + permute(0,3,1,2):
    #   out[0, 0, r, c] = flat[(r % OH) * CO + c],  flat[k] = vals[k]
    # -> even rows take flat[0:3], odd rows flat[3:6], pattern repeated 3x.
    row0 = jnp.concatenate(vals[0:3], axis=1)         # (1, 3)
    row1 = jnp.concatenate(vals[3:6], axis=1)         # (1, 3)
    v23 = jnp.concatenate([row0, row1], axis=0)       # (2, 3)
    out = jnp.concatenate([v23, v23, v23], axis=0)    # (6, 3)
    o_ref[...] = out.reshape(1, 1, R_OUT, C_OUT)


@jax.jit
def model_forward(x, weight, bias):
    # Contiguous reinterprets (no data movement): lane-dense 2D inputs.
    x2 = x.reshape(CI, H * W)                         # (3, 16)
    w2 = weight.reshape(CO * CI, KH * KW)             # (9, 12)
    return pl.pallas_call(
        fused_model_kernel,
        out_shape=jax.ShapeDtypeStruct((1, 1, R_OUT, C_OUT), jnp.float32),
        in_specs=[
            pl.BlockSpec(memory_space=pltpu.MemorySpace.VMEM),    # x2
            pl.BlockSpec(memory_space=pltpu.MemorySpace.VMEM),    # w2
            pl.BlockSpec(memory_space=pltpu.MemorySpace.SMEM),    # bias (3 scalars)
        ],
        out_specs=pl.BlockSpec(memory_space=pltpu.MemorySpace.VMEM),
        cost_estimate=pl.CostEstimate(
            flops=2 * CO * OH * CI * KH * KW,                     # 432
            transcendentals=0,
            bytes_accessed=(CI * H * W + CO * CI * KH * KW + CO
                            + R_OUT * C_OUT) * 4),
    )(x2, w2, bias)


if __name__ == "__main__":
    key = jax.random.PRNGKey(0)
    kx, kw, kb = jax.random.split(key, 3)

    # Deterministic synthetic parameters (Conv2d(3, 3, (3, 4)) shapes).
    x = jax.random.normal(kx, (1, CI, H, W), dtype=jnp.float32)
    fan_in = CI * KH * KW
    bound = 1.0 / (fan_in ** 0.5)
    weight = jax.random.uniform(kw, (CO, CI, KH, KW), jnp.float32, -bound, bound)
    bias = jax.random.uniform(kb, (CO,), jnp.float32, -bound, bound)

    out = model_forward(x, weight, bias)
    out = jax.block_until_ready(out)

    # Reference: XLA conv (same semantics as nn.Conv2d) + the same reshuffle.
    ref_conv = lax.conv_general_dilated(
        x, weight, window_strides=(1, 1), padding="VALID",
        dimension_numbers=("NCHW", "OIHW", "NCHW"),
    ) + bias.reshape(1, CO, 1, 1)                       # (1, 3, 2, 1)
    ref = ref_conv.reshape(1, 2, 3, 1)                  # torch .view(1, 2, 3, 1)
    ref = jnp.concatenate([ref, ref, ref], axis=1)      # (1, 6, 3, 1)
    ref = jnp.transpose(ref, (0, 3, 1, 2))              # (1, 1, 6, 3)

    assert out.shape == (1, 1, R_OUT, C_OUT), out.shape
    assert jnp.allclose(out, ref, atol=1e-5, rtol=1e-5)
    print("KERNEL_OK")
</pallas_src>

<mosaic_0001>
module attributes {stable_mosaic.version = 11 : i64} {
  func.func @fused_model_kernel(%arg0: memref<3x16xf32, #tpu.memory_space<vmem>>, %arg1: memref<9x12xf32, #tpu.memory_space<vmem>>, %arg2: memref<3xf32, #tpu.memory_space<smem>>, %arg3: memref<1x1x6x3xf32, #tpu.memory_space<vmem>>) attributes {dimension_semantics = [], scalar_prefetch = 0 : i64, scratch_operands = 0 : i64, tpu.core_type = #tpu.core_type<tc>} {
    %c0 = arith.constant 0 : index
    %c0_0 = arith.constant 0 : index
    %0 = vector.load %arg0[%c0, %c0_0] : memref<3x16xf32, #tpu.memory_space<vmem>>, vector<3x16xf32>
    %c0_1 = arith.constant 0 : index
    %c0_2 = arith.constant 0 : index
    %1 = vector.load %arg1[%c0_1, %c0_2] : memref<9x12xf32, #tpu.memory_space<vmem>>, vector<9x12xf32>
    %2 = vector.extract_strided_slice %0 {offsets = [0, 0], sizes = [3, 12], strides = [1, 1]} : vector<3x16xf32> to vector<3x12xf32>
    %3 = vector.extract_strided_slice %0 {offsets = [0, 4], sizes = [3, 12], strides = [1, 1]} : vector<3x16xf32> to vector<3x12xf32>
    %4 = vector.extract_strided_slice %1 {offsets = [0, 0], sizes = [3, 12], strides = [1, 1]} : vector<9x12xf32> to vector<3x12xf32>
    %c0_3 = arith.constant 0 : index
    %5 = memref.load %arg2[%c0_3] : memref<3xf32, #tpu.memory_space<smem>>
    %6 = arith.mulf %2, %4 : vector<3x12xf32>
    %cst = arith.constant dense<0.000000e+00> : vector<3xf32>
    %7 = vector.multi_reduction <add>, %6, %cst [1] : vector<3x12xf32> to vector<3xf32>
    %8 = vector.shape_cast %7 : vector<3xf32> to vector<3x1xf32>
    %9 = vector.extract_strided_slice %8 {offsets = [0, 0], sizes = [1, 1], strides = [1, 1]} : vector<3x1xf32> to vector<1x1xf32>
    %10 = vector.extract_strided_slice %8 {offsets = [1, 0], sizes = [1, 1], strides = [1, 1]} : vector<3x1xf32> to vector<1x1xf32>
    %11 = arith.addf %9, %10 : vector<1x1xf32>
    %12 = vector.extract_strided_slice %8 {offsets = [2, 0], sizes = [1, 1], strides = [1, 1]} : vector<3x1xf32> to vector<1x1xf32>
    %13 = arith.addf %11, %12 : vector<1x1xf32>
    %14 = vector.broadcast %5 : f32 to vector<1x1xf32>
    %15 = arith.addf %13, %14 : vector<1x1xf32>
    %16 = arith.mulf %3, %4 : vector<3x12xf32>
    %cst_4 = arith.constant dense<0.000000e+00> : vector<3xf32>
    %17 = vector.multi_reduction <add>, %16, %cst_4 [1] : vector<3x12xf32> to vector<3xf32>
    %18 = vector.shape_cast %17 : vector<3xf32> to vector<3x1xf32>
    %19 = vector.extract_strided_slice %18 {offsets = [0, 0], sizes = [1, 1], strides = [1, 1]} : vector<3x1xf32> to vector<1x1xf32>
    %20 = vector.extract_strided_slice %18 {offsets = [1, 0], sizes = [1, 1], strides = [1, 1]} : vector<3x1xf32> to vector<1x1xf32>
    %21 = arith.addf %19, %20 : vector<1x1xf32>
    %22 = vector.extract_strided_slice %18 {offsets = [2, 0], sizes = [1, 1], strides = [1, 1]} : vector<3x1xf32> to vector<1x1xf32>
    %23 = arith.addf %21, %22 : vector<1x1xf32>
    %24 = vector.broadcast %5 : f32 to vector<1x1xf32>
    %25 = arith.addf %23, %24 : vector<1x1xf32>
    %26 = vector.extract_strided_slice %1 {offsets = [3, 0], sizes = [3, 12], strides = [1, 1]} : vector<9x12xf32> to vector<3x12xf32>
    %c1 = arith.constant 1 : index
    %27 = memref.load %arg2[%c1] : memref<3xf32, #tpu.memory_space<smem>>
    %28 = arith.mulf %2, %26 : vector<3x12xf32>
    %cst_5 = arith.constant dense<0.000000e+00> : vector<3xf32>
    %29 = vector.multi_reduction <add>, %28, %cst_5 [1] : vector<3x12xf32> to vector<3xf32>
    %30 = vector.shape_cast %29 : vector<3xf32> to vector<3x1xf32>
    %31 = vector.extract_strided_slice %30 {offsets = [0, 0], sizes = [1, 1], strides = [1, 1]} : vector<3x1xf32> to vector<1x1xf32>
    %32 = vector.extract_strided_slice %30 {offsets = [1, 0], sizes = [1, 1], strides = [1, 1]} : vector<3x1xf32> to vector<1x1xf32>
    %33 = arith.addf %31, %32 : vector<1x1xf32>
    %34 = vector.extract_strided_slice %30 {offsets = [2, 0], sizes = [1, 1], strides = [1, 1]} : vector<3x1xf32> to vector<1x1xf32>
    %35 = arith.addf %33, %34 : vector<1x1xf32>
    %36 = vector.broadcast %27 : f32 to vector<1x1xf32>
    %37 = arith.addf %35, %36 : vector<1x1xf32>
    %38 = arith.mulf %3, %26 : vector<3x12xf32>
    %cst_6 = arith.constant dense<0.000000e+00> : vector<3xf32>
    %39 = vector.multi_reduction <add>, %38, %cst_6 [1] : vector<3x12xf32> to vector<3xf32>
    %40 = vector.shape_cast %39 : vector<3xf32> to vector<3x1xf32>
    %41 = vector.extract_strided_slice %40 {offsets = [0, 0], sizes = [1, 1], strides = [1, 1]} : vector<3x1xf32> to vector<1x1xf32>
    %42 = vector.extract_strided_slice %40 {offsets = [1, 0], sizes = [1, 1], strides = [1, 1]} : vector<3x1xf32> to vector<1x1xf32>
    %43 = arith.addf %41, %42 : vector<1x1xf32>
    %44 = vector.extract_strided_slice %40 {offsets = [2, 0], sizes = [1, 1], strides = [1, 1]} : vector<3x1xf32> to vector<1x1xf32>
    %45 = arith.addf %43, %44 : vector<1x1xf32>
    %46 = vector.broadcast %27 : f32 to vector<1x1xf32>
    %47 = arith.addf %45, %46 : vector<1x1xf32>
    %48 = vector.extract_strided_slice %1 {offsets = [6, 0], sizes = [3, 12], strides = [1, 1]} : vector<9x12xf32> to vector<3x12xf32>
    %c2 = arith.constant 2 : index
    %49 = memref.load %arg2[%c2] : memref<3xf32, #tpu.memory_space<smem>>
    %50 = arith.mulf %2, %48 : vector<3x12xf32>
    %cst_7 = arith.constant dense<0.000000e+00> : vector<3xf32>
    %51 = vector.multi_reduction <add>, %50, %cst_7 [1] : vector<3x12xf32> to vector<3xf32>
    %52 = vector.shape_cast %51 : vector<3xf32> to vector<3x1xf32>
    %53 = vector.extract_strided_slice %52 {offsets = [0, 0], sizes = [1, 1], strides = [1, 1]} : vector<3x1xf32> to vector<1x1xf32>
    %54 = vector.extract_strided_slice %52 {offsets = [1, 0], sizes = [1, 1], strides = [1, 1]} : vector<3x1xf32> to vector<1x1xf32>
    %55 = arith.addf %53, %54 : vector<1x1xf32>
    %56 = vector.extract_strided_slice %52 {offsets = [2, 0], sizes = [1, 1], strides = [1, 1]} : vector<3x1xf32> to vector<1x1xf32>
    %57 = arith.addf %55, %56 : vector<1x1xf32>
    %58 = vector.broadcast %49 : f32 to vector<1x1xf32>
    %59 = arith.addf %57, %58 : vector<1x1xf32>
    %60 = arith.mulf %3, %48 : vector<3x12xf32>
    %cst_8 = arith.constant dense<0.000000e+00> : vector<3xf32>
    %61 = vector.multi_reduction <add>, %60, %cst_8 [1] : vector<3x12xf32> to vector<3xf32>
    %62 = vector.shape_cast %61 : vector<3xf32> to vector<3x1xf32>
    %63 = vector.extract_strided_slice %62 {offsets = [0, 0], sizes = [1, 1], strides = [1, 1]} : vector<3x1xf32> to vector<1x1xf32>
    %64 = vector.extract_strided_slice %62 {offsets = [1, 0], sizes = [1, 1], strides = [1, 1]} : vector<3x1xf32> to vector<1x1xf32>
    %65 = arith.addf %63, %64 : vector<1x1xf32>
    %66 = vector.extract_strided_slice %62 {offsets = [2, 0], sizes = [1, 1], strides = [1, 1]} : vector<3x1xf32> to vector<1x1xf32>
    %67 = arith.addf %65, %66 : vector<1x1xf32>
    %68 = vector.broadcast %49 : f32 to vector<1x1xf32>
    %69 = arith.addf %67, %68 : vector<1x1xf32>
    %70 = tpu.concatenate %15, %25, %37 in 1 : vector<1x1xf32>, vector<1x1xf32>, vector<1x1xf32> -> vector<1x3xf32>
    %71 = tpu.concatenate %47, %59, %69 in 1 : vector<1x1xf32>, vector<1x1xf32>, vector<1x1xf32> -> vector<1x3xf32>
    %72 = tpu.concatenate %70, %71 in 0 : vector<1x3xf32>, vector<1x3xf32> -> vector<2x3xf32>
    %73 = tpu.concatenate %72, %72, %72 in 0 : vector<2x3xf32>, vector<2x3xf32>, vector<2x3xf32> -> vector<6x3xf32>
    %74 = vector.shape_cast %73 : vector<6x3xf32> to vector<1x1x6x3xf32>
    %c0_9 = arith.constant 0 : index
    %c0_10 = arith.constant 0 : index
    %c0_11 = arith.constant 0 : index
    %c0_12 = arith.constant 0 : index
    %75 = vector.load %arg3[%c0_9, %c0_10, %c0_11, %c0_12] : memref<1x1x6x3xf32, #tpu.memory_space<vmem>>, vector<1x1x6x3xf32>
    tpu.vector_store %arg3[%c0_9, %c0_10, %c0_11, %c0_12], %74 {strides = array<i32>} : memref<1x1x6x3xf32, #tpu.memory_space<vmem>>, vector<1x1x6x3xf32>,
    return
  }
}

</mosaic_0001>

<bundles_post_ra>
// kernel: model_forward.1
= control target key start
LH: loop header
LB: loop body
LE: loop exit
PB: predicated region body
PF: predicated region fallthrough
CT: control target
= control target key end

     0   :  { %8 = vsyncpa [#allocation3], 0  ;;  %s253_s0 = inlined_call_operand.vmem [shape: f32[3,16], index: 0, kind: input, shape index: {}]   ;;  %s254_s1 = inlined_call_operand.vmem [shape: f32[9,12], index: 1, kind: input, shape index: {}]   ;;  %s255_s2 = inlined_call_operand.vmem [shape: f32[3], index: 2, kind: input, shape index: {}]   ;;  %s256_s3 = inlined_call_operand.vmem [shape: f32[1,1,6,3], index: 3, kind: output, shape index: {}]  }
   0x1   :  { %s19_s14 = sshll.u32 %s255_s2, 4  ;;  %s20_s14 = int_to_ptr.vmem [resolvable:$true] %s19_s14 }
   0x2   :  { %s188_s15 = scalar_lea.vmem %s20_s14, 16  ;;  %p193_p1 = scmp.lt.s32.totalorder %s20_s14, %s20_s14 }
   0x3   :  { %p189_p0 = scmp.ne.s32.totalorder %s20_s14, %s188_s15  ;;  %p194_p2 = scmp.lt.s32.totalorder %s188_s15, %s188_s15 }
   0x5   :  { %p195_p3 = por %p194_p2, %p193_p1 }
   0x7   :  { %p196_p4 = pnand %p195_p3, %p189_p0 }
   0x9   :  { %199 = shalt.err (!%p196_p4)
}
   0xa   :  { %s202_s16 = smov [#allocation2]  }
   0xb   :  { %22 = dma.vmem_to_smem %s20_s14, 16, %s202_s16, [#allocation3]  }
   0xc   :  { %200 = dma.done.wait [#allocation3], 16  }
   0xd   :  { %201 = vsyncadd [#allocation3], 4294967280 }
   0xe   :  { %26 = sfence }
   0xf   :  { %v28_v0 = vld [vmem:[%s254_s1] sm:$0xff]  ;;  %v29_v1 = vld [vmem:[%s254_s1 + $0x8] sm:$0x1]  ;;  %vm102_vm0 = vcmask 1041408   ;;  %s203_s2 = smov 4   ;;  %s204_s23 = smov 124  }
  0x10   :  { %v103_v2 = vrot.slane %v28_v0, 6  ;;  %v104_v3 = vrot.slane %v29_v1, 6  ;;  %v66_v4 = vrot.slane %v28_v0, 3  ;;  %v27_v6 = vld [vmem:[%s253_s0] sm:$0x7]  ;;  %vm32_vm1 = vcmask 92160  }
  0x11   :  { %v31_v23 = vmul.f32 %v28_v0, %v27_v6  ;;  %s182_s0 = sld [smem:[#allocation2 + $0x2]]  ;;  %s205_s1 = smov 1   ;;  %vm147_vm2 = vcmask 7168   ;;  %vm149_vm3 = vcmask 15360   ;;  %vm164_vm4 = vcmask 1040384  }
  0x12   :  { %v105_v5 = vsel %vm102_vm0, %v103_v2, %v104_v3  ;;  %81 = vrot.lane.b32.xlu1 %v66_v4, %s203_s2  ;;  %v68_v17 = vmul.f32 %v66_v4, %v27_v6  ;;  %s246_s24 = sld [smem:[#allocation2]]  ;;  %s206_s26 = smov 2   ;;  %vm172_vm5 = vcmask 1043456   ;;  %vm174_vm6 = vcmask 21504  }
  0x13   :  { %120 = vrot.lane.b32.xlu0 %v105_v5, %s203_s2  ;;  %v107_v13 = vmul.f32 %v105_v5, %v27_v6  ;;  %v33_v24 = vsel %vm32_vm1, %v31_v23, 0.0  ;;  %s181_s25 = sld [smem:[#allocation2 + $0x1]] }
  0x14   :  { %v69_v22 = vsel %vm32_vm1, %v68_v17, 0.0 }
  0x15   :  { %v108_v14 = vsel %vm32_vm1, %v107_v13, 0.0 }
  0x17   :  { %46 = vrot.lane.b32.xlu0 %v28_v0, %s203_s2  ;;  %v118_v29 = vstv %s182_s0 }
  0x18   :  { %v43_v40 = vstv %s246_s24 }
  0x19   :  { %v79_v50 = vstv %s181_s25 }
  0x84   :  { %v82_v8 = vpop.permute.xlu1 %81 }
  0x85   :  { %v121_v7 = vpop.permute.xlu0 %120  ;;  %v84_v10 = vmul.f32 %v82_v8, %v27_v6 }
  0x86   :  { %v123_v9 = vmul.f32 %v121_v7, %v27_v6 }
  0x88   :  { %125 = vrot.lane.b32.xlu1 %v123_v9, %s204_s23 }
  0x89   :  { %v47_v11 = vpop.permute.xlu0 %46 }
  0x8a   :  { %v49_v12 = vmul.f32 %v47_v11, %v27_v6 }
  0x8c   :  { %51 = vrot.lane.b32.xlu0 %v49_v12, %s204_s23  ;;  %86 = vrot.lane.b32.xlu1 %v84_v10, %s204_s23 }
  0xab   :  { %109 = vadd.xlane.f32.xlu0 %v108_v14 }
  0xfa   :  { %v126_v15 = vpop.permute.xlu1 %125 }
  0xfb   :  { %v128_v16 = vsel %vm32_vm1, %v126_v15, 0.0 }
  0xfc   :  { %129 = vadd.xlane.f32.xlu1 %v128_v16 }
  0xfe   :  { %v52_v18 = vpop.permute.xlu0 %51  ;;  %v87_v19 = vpop.permute.xlu1 %86 }
  0xff   :  { %v54_v20 = vsel %vm32_vm1, %v52_v18, 0.0  ;;  %v89_v21 = vsel %vm32_vm1, %v87_v19, 0.0 }
 0x100   :  { %55 = vadd.xlane.f32.xlu0 %v54_v20  ;;  %90 = vadd.xlane.f32.xlu1 %v89_v21 }
 0x104   :  { %70 = vadd.xlane.f32.xlu0 %v69_v22 }
 0x108   :  { %34 = vadd.xlane.f32.xlu0 %v33_v24 }
 0x134   :  { %v110_v25 = vpop.xlane.xlu0 %109 }
 0x135   :  { %v112_v26 = vrot.slane %v110_v25, 1  ;;  %v115_v27 = vrot.slane %v110_v25, 2 }
 0x137   :  { %v114_v28 = vadd.f32 %v112_v26, %v110_v25 }
 0x139   :  { %v117_v30 = vadd.f32 %v115_v27, %v114_v28 }
 0x13b   :  { %v119_v31 = vadd.f32 %v118_v29, %v117_v30 }
 0x13d   :  { %152 = vrot.lane.b32.xlu0 %v119_v31, %s205_s1 }
 0x185   :  { %v130_v32 = vpop.xlane.xlu1 %129 }
 0x186   :  { %v132_v33 = vrot.slane %v130_v32, 1  ;;  %v135_v41 = vrot.slane %v130_v32, 2 }
 0x188   :  { %v134_v36 = vadd.f32 %v132_v33, %v130_v32 }
 0x189   :  { %v56_v34 = vpop.xlane.xlu0 %55  ;;  %v91_v52 = vpop.xlane.xlu1 %90 }
 0x18a   :  { %v58_v35 = vrot.slane %v56_v34, 1  ;;  %v61_v38 = vrot.slane %v56_v34, 2  ;;  %v137_v44 = vadd.f32 %v135_v41, %v134_v36  ;;  %v93_v53 = vrot.slane %v91_v52, 1 }
 0x18b   :  { %v96_v56 = vrot.slane %v91_v52, 2 }
 0x18c   :  { %v60_v37 = vadd.f32 %v58_v35, %v56_v34  ;;  %v138_v49 = vadd.f32 %v137_v44, %v118_v29  ;;  %v95_v55 = vadd.f32 %v93_v53, %v91_v52 }
 0x18d   :  { %v71_v39 = vpop.xlane.xlu0 %70 }
 0x18e   :  { %v63_v42 = vadd.f32 %v61_v38, %v60_v37  ;;  %v73_v43 = vrot.slane %v71_v39, 1  ;;  %v76_v46 = vrot.slane %v71_v39, 2  ;;  %v98_v58 = vadd.f32 %v96_v56, %v95_v55 }
 0x190   :  { %v75_v45 = vadd.f32 %v73_v43, %v71_v39  ;;  %v64_v47 = vadd.f32 %v63_v42, %v43_v40  ;;  %v99_v62 = vadd.f32 %v98_v58, %v79_v50 }
 0x191   :  { %v35_v54 = vpop.xlane.xlu0 %34 }
 0x192   :  { %140 = vrot.lane.b32.xlu1 %v64_v47, %s205_s1  ;;  %v78_v48 = vadd.f32 %v76_v46, %v75_v45  ;;  %v37_v57 = vrot.slane %v35_v54, 1  ;;  %v40_v60 = vrot.slane %v35_v54, 2 }
 0x194   :  { %v80_v51 = vadd.f32 %v79_v50, %v78_v48  ;;  %v39_v59 = vadd.f32 %v37_v57, %v35_v54 }
 0x196   :  { %156 = vrot.lane.b32.xlu1 %v138_v49, %s206_s26  ;;  %v42_v61 = vadd.f32 %v40_v60, %v39_v59 }
 0x198   :  { %v44_v2 = vadd.f32 %v43_v40, %v42_v61 }
 0x19a   :  { %144 = vrot.lane.b32.xlu1 %v80_v51, %s206_s26 }
 0x1af   :  { %v153_v0 = vpop.permute.xlu0 %152 }
 0x1b0   :  { %v159_v1 = vsel %vm147_vm2, %v99_v62, %v153_v0 }
 0x204   :  { %v141_v63 = vpop.permute.xlu1 %140 }
 0x205   :  { %v148_v5 = vsel %vm147_vm2, %v44_v2, %v141_v63 }
 0x208   :  { %v157_v3 = vpop.permute.xlu1 %156 }
 0x209   :  { %v160_v4 = vsel %vm149_vm3, %v159_v1, %v157_v3 }
 0x20a   :  { %v162_v6 = vrot.slane %v160_v4, 7 }
 0x20c   :  { %v145_v7 = vpop.permute.xlu1 %144 }
 0x20d   :  { %v150_v8 = vsel %vm149_vm3, %v148_v5, %v145_v7 }
 0x20e   :  { %v165_v9 = vsel %vm164_vm4, %v150_v8, %v162_v6 }
 0x20f   :  { %v167_v10 = vrot.slane %v165_v9, 6  ;;  %v169_v11 = vrot.slane %v165_v9, 4 }
 0x211   :  { %v171_v12 = vsel %vm102_vm0, %v165_v9, %v167_v10 }
 0x212   :  { %v173_v13 = vsel %vm172_vm5, %v171_v12, %v169_v11 }
 0x213   :  { %175 = vst.msk [vmem:[%s256_s3] sm:$0x3f] %vm174_vm6, %v173_v13 }
 0x214   :  { %180 = vsyncpa [#allocation3], 1 }

</bundles_post_ra>
